<compile_context>
chip_gen: v7x
topology: tpu7x:2x2x1
jax: 0.10.0
libtpu: 0.0.40
codegen_flags: <defaults>
</compile_context>

<pallas_src>
import functools
import math

import jax
import jax.numpy as jnp
from jax import lax
from jax.experimental import pallas as pl
from jax.experimental.pallas import tpu as pltpu


def _round_down(x, m):
    return (x // m) * m


def _round_up(x, m):
    return ((x + m - 1) // m) * m


def _default_splits():
    """2 grid splits on multi-TensorCore chips, 1 on v5e/v6e (single TC)."""
    try:
        kind = jax.devices()[0].device_kind.lower()
    except Exception:
        return 2
    if "lite" in kind or "v5e" in kind or "v6e" in kind:
        return 1
    return 2


def _choose_tiles(n, c, dtype, max_tile_rows=None):
    """Pick (tile_n, chunk_rows): HBM-sized grid tile + in-kernel row chunk."""
    itemsize = jnp.dtype(dtype).itemsize
    sub = {4: 8, 2: 16, 1: 32}.get(itemsize, 8)      # sublane multiple per dtype
    c_pad = _round_up(c, 128)                        # VMEM lane padding

    if n <= sub:
        return n, n

    # ~4 MiB of HBM bytes per logits tile amortizes the ~0.35 us grid-step
    # overhead even at v7x HBM speeds.
    tile_hbm = (4 * 1024 * 1024) // max(1, c * itemsize)

    # Double-buffered VMEM per row: logits block + packed (tile_n, 2) f32 side
    # block (lane-padded to 128 -> 512 B/row/buffer).
    per_row_vmem = 2 * c_pad * itemsize + 2 * 128 * 4
    tile_vmem = (20 * 1024 * 1024) // per_row_vmem

    tile_n = min(tile_hbm, tile_vmem, _round_down(n, sub))
    if max_tile_rows is not None:
        tile_n = min(tile_n, max(sub, _round_down(max_tile_rows, sub)))
    tile_n = max(sub, _round_down(tile_n, sub))

    # Row chunk for the in-kernel streaming loop: ~128 KiB of f32 per
    # intermediate so per-chunk temporaries stay near vreg capacity.
    chunk = min(512, max(sub, (128 * 1024) // (c_pad * 4)))
    chunk = max(sub, _round_down(chunk, sub))
    if tile_n > chunk:
        tile_n = _round_down(tile_n, chunk)          # keep tile a chunk multiple
    else:
        chunk = tile_n
    return tile_n, chunk


def _psc_ls_kernel(logits_ref, side_ref, out_ref, acc_ref, *,
                   n_rows, n_classes, tile_n, chunk_rows, tiles_per_split,
                   needs_mask):
    t = pl.program_id(1)

    @pl.when(t == 0)
    def _init():
        acc_ref[...] = jnp.zeros_like(acc_ref)

    s = pl.program_id(0)
    tile = s * tiles_per_split + t                   # un-clamped tile id
    tile_row0 = tile * tile_n

    log_c = jnp.float32(math.log(n_classes))
    inv_c = jnp.float32(1.0 / n_classes)
    n_chunks = tile_n // chunk_rows
    # Hoisted constants (JAX does not CSE broadcasts/iotas inside loops).
    cols = lax.broadcasted_iota(jnp.int32, (chunk_rows, n_classes), 1)
    row_iota = lax.broadcasted_iota(jnp.int32, (chunk_rows, 1), 0)

    def chunk_body(ci, carry):
        r0 = pl.multiple_of(ci * chunk_rows, chunk_rows)
        x = logits_ref[pl.ds(r0, chunk_rows), :].astype(jnp.float32)   # (R, C)
        sd = side_ref[pl.ds(r0, chunk_rows), :]                        # (R, 2)
        tgt = sd[:, 0:1].astype(jnp.int32)        # exact for n_classes < 2**24
        cs = sd[:, 1:2]                                                # (R, 1)

        # Row-wise logsumexp (max -> EUP exp -> lane-sum).
        m = jnp.max(x, axis=1, keepdims=True)
        lse = jnp.log(jnp.sum(jnp.exp(x - m), axis=1, keepdims=True)) + m

        # Fused weighted row-sum: cs*x[n, tgt] + (1-cs)*mean_c x[n, c].
        one_m_cs = 1.0 - cs
        w_uni = one_m_cs * inv_c                                       # (R, 1)
        w = jnp.where(cols == tgt, w_uni + cs, w_uni)                  # (R, C)
        combined = jnp.sum(w * x, axis=1, keepdims=True)               # (R, 1)

        total = lse - combined - one_m_cs * log_c                      # (R, 1)

        if needs_mask:
            rows = row_iota + (tile_row0 + r0)
            total = jnp.where(rows < n_rows, total, 0.0)  # select: drops NaN/Inf

        return carry + jnp.sum(total, axis=0, keepdims=True)           # (1, 1)

    part = lax.fori_loop(0, n_chunks, chunk_body,
                         jnp.zeros((1, 1), jnp.float32))
    acc_ref[...] += part

    @pl.when(t == pl.num_programs(1) - 1)
    def _finalize():
        out_ref[0] = acc_ref[...]


def psc_ls_loss(logits, targets, consistency_scores, *,
                num_core_splits=None, max_tile_rows=None):
    """mean_n[ cs*CE(logits, target) + (1-cs)*KL(uniform || softmax(logits)) ]."""
    if logits.ndim != 2:
        raise ValueError("logits must be (N, C)")
    if logits.dtype.itemsize not in (1, 2, 4):
        logits = logits.astype(jnp.float32)
    n, c = logits.shape

    tile_n, chunk_rows = _choose_tiles(n, c, logits.dtype, max_tile_rows)
    n_tiles = pl.cdiv(n, tile_n)
    splits = _default_splits() if num_core_splits is None else int(num_core_splits)
    splits = max(1, min(splits, n_tiles))
    tiles_per_split = pl.cdiv(n_tiles, splits)
    needs_mask = splits * tiles_per_split * tile_n != n

    # Pack (target, cs) into ONE (N, 2) f32 side array -> a single lane-padded
    # side block per tile instead of two. HBM cost: 8 B/row (negligible).
    side = jnp.concatenate(
        [targets.reshape(n, 1).astype(jnp.float32),
         consistency_scores.reshape(n, 1).astype(jnp.float32)], axis=1)

    def tile_idx(si, ti):
        # Clamp: fully-out-of-range (si, ti) slots re-read the last tile and
        # are masked to zero inside the kernel.
        return jnp.minimum(si * tiles_per_split + ti, n_tiles - 1)

    kernel = functools.partial(
        _psc_ls_kernel, n_rows=n, n_classes=c, tile_n=tile_n,
        chunk_rows=chunk_rows, tiles_per_split=tiles_per_split,
        needs_mask=needs_mask)

    partials = pl.pallas_call(
        kernel,
        out_shape=jax.ShapeDtypeStruct((splits, 1, 1), jnp.float32),
        grid_spec=pltpu.PrefetchScalarGridSpec(
            num_scalar_prefetch=0,
            grid=(splits, tiles_per_split),
            in_specs=[
                pl.BlockSpec((tile_n, c), lambda si, ti: (tile_idx(si, ti), 0)),
                pl.BlockSpec((tile_n, 2), lambda si, ti: (tile_idx(si, ti), 0)),
            ],
            out_specs=pl.BlockSpec((1, 1, 1), lambda si, ti: (si, 0, 0)),
            scratch_shapes=[pltpu.VMEM((1, 1), jnp.float32)],
        ),
        compiler_params=pltpu.CompilerParams(
            dimension_semantics=("parallel", "arbitrary"),
            vmem_limit_bytes=32 * 1024 * 1024),
    )(logits, side)   # logits consumed in native dtype (bf16 halves HBM bytes)

    return jnp.sum(partials) / n


def _psc_ls_ref(logits, targets, consistency_scores):
    # Pure-JAX reference mirroring the PyTorch forward.
    log_preds = jax.nn.log_softmax(logits.astype(jnp.float32), axis=1)
    n, c = log_preds.shape
    onehot = jax.nn.one_hot(targets, c, dtype=jnp.float32)
    ce = jnp.sum(-onehot * log_preds, axis=1)
    kld = jnp.sum((1.0 / c) * (jnp.log(jnp.float32(1.0 / c)) - log_preds), axis=1)
    cs = consistency_scores.astype(jnp.float32)
    return jnp.mean(cs * ce + (1.0 - cs) * kld)


if __name__ == "__main__":
    key = jax.random.PRNGKey(0)
    ks = jax.random.split(key, 9)

    def check(got, want, tol, name):
        got = jax.block_until_ready(got)
        if not jnp.allclose(got, want, atol=tol, rtol=tol):
            raise AssertionError(f"{name} mismatch: kernel={got} ref={want}")

    # Case 1: tiny f32 problem -> single tile, single chunk, no masking.
    n1, c1 = 16, 32
    logits1 = jax.random.normal(ks[0], (n1, c1), dtype=jnp.float32)
    targets1 = jax.random.randint(ks[1], (n1,), 0, c1, dtype=jnp.int32)
    cs1 = jax.random.uniform(ks[2], (n1,), dtype=jnp.float32)
    check(psc_ls_loss(logits1, targets1, cs1),
          _psc_ls_ref(logits1, targets1, cs1), 1e-5, "case1")

    # Case 2: bf16 logits, N not a multiple of the tile, forced 2-way split
    # -> exercises partial-tile masking and the bf16 (16-sublane) tiling.
    n2, c2 = 50, 128
    logits2 = jax.random.normal(ks[3], (n2, c2),
                                dtype=jnp.float32).astype(jnp.bfloat16)
    targets2 = jax.random.randint(ks[4], (n2,), 0, c2, dtype=jnp.int32)
    cs2 = jax.random.uniform(ks[5], (n2,), dtype=jnp.float32)
    check(psc_ls_loss(logits2, targets2, cs2, num_core_splits=2),
          _psc_ls_ref(logits2, targets2, cs2), 1e-4, "case2")

    # Case 3: f32, multi-chunk streaming loop (default tiles) and, separately,
    # forced tiny tiles with 2 splits -> clamped duplicate tile + masking.
    n3, c3 = 700, 64
    logits3 = jax.random.normal(ks[6], (n3, c3), dtype=jnp.float32)
    targets3 = jax.random.randint(ks[7], (n3,), 0, c3, dtype=jnp.int32)
    cs3 = jax.random.uniform(ks[8], (n3,), dtype=jnp.float32)
    ref3 = _psc_ls_ref(logits3, targets3, cs3)
    check(psc_ls_loss(logits3, targets3, cs3), ref3, 1e-5, "case3a")
    check(psc_ls_loss(logits3, targets3, cs3, num_core_splits=2,
                      max_tile_rows=64), ref3, 1e-5, "case3b")

    print("KERNEL_OK")
</pallas_src>

<mosaic_0001>
module attributes {stable_mosaic.version = 11 : i64} {
  func.func @_psc_ls_kernel(%arg0: i32, %arg1: i32, %arg2: memref<16x32xf32, #tpu.memory_space<vmem>>, %arg3: memref<16x2xf32, #tpu.memory_space<vmem>>, %arg4: memref<1x1x1xf32, #tpu.memory_space<vmem>>, %arg5: memref<1x1xf32, #tpu.memory_space<vmem>>) attributes {dimension_semantics = [#tpu.dimension_semantics<parallel>, #tpu.dimension_semantics<arbitrary>], iteration_bounds = array<i64: 1, 1>, scalar_prefetch = 0 : i64, scratch_operands = 1 : i64, tpu.core_type = #tpu.core_type<tc>, window_params = [{transform_indices = @transform_0, window_bounds = array<i64: 16, 32>}, {transform_indices = @transform_1, window_bounds = array<i64: 16, 2>}, {transform_indices = @transform_2, window_bounds = array<i64: 1, 1, 1>}]} {
    %c0_i32 = arith.constant 0 : i32
    %0 = arith.cmpi eq, %arg1, %c0_i32 : i32
    %1 = arith.extui %0 : i1 to i32
    %c0_i32_0 = arith.constant 0 : i32
    %2 = arith.cmpi ne, %1, %c0_i32_0 : i32
    scf.if %2 {
      %cst_16 = arith.constant 0.000000e+00 : f32
      %51 = vector.broadcast %cst_16 : f32 to vector<1x1xf32>
      %c0_17 = arith.constant 0 : index
      %c0_18 = arith.constant 0 : index
      %52 = vector.load %arg5[%c0_17, %c0_18] : memref<1x1xf32, #tpu.memory_space<vmem>>, vector<1x1xf32>
      tpu.vector_store %arg5[%c0_17, %c0_18], %51 {strides = array<i32>} : memref<1x1xf32, #tpu.memory_space<vmem>>, vector<1x1xf32>,
    } else {
    }
    %3 = tpu.iota {dimensions = array<i32: 1>} : vector<16x32xi32>
    %cst = arith.constant 0.000000e+00 : f32
    %4 = vector.broadcast %cst : f32 to vector<1x1xf32>
    %cst_1 = arith.constant 3.125000e-02 : f32
    %cst_2 = arith.constant 3.46573591 : f32
    %c0_i32_3 = arith.constant 0 : i32
    %c16_i32 = arith.constant 16 : i32
    %5 = arith.muli %c0_i32_3, %c16_i32 : i32
    %6 = tpu.assume_multiple %5, 16 : i32
    %7 = arith.index_cast %6 : i32 to index
    %c0 = arith.constant 0 : index
    %8 = vector.load %arg2[%7, %c0] : memref<16x32xf32, #tpu.memory_space<vmem>>, vector<16x32xf32>
    %9 = arith.index_cast %6 : i32 to index
    %c0_4 = arith.constant 0 : index
    %10 = vector.load %arg3[%9, %c0_4] : memref<16x2xf32, #tpu.memory_space<vmem>>, vector<16x2xf32>
    %11 = vector.extract_strided_slice %10 {offsets = [0, 0], sizes = [16, 1], strides = [1, 1]} : vector<16x2xf32> to vector<16x1xf32>
    %12 = arith.fptosi %11 : vector<16x1xf32> to vector<16x1xi32>
    %13 = vector.extract_strided_slice %10 {offsets = [0, 1], sizes = [16, 1], strides = [1, 1]} : vector<16x2xf32> to vector<16x1xf32>
    %cst_5 = arith.constant dense<0xFF800000> : vector<16xf32>
    %14 = vector.multi_reduction <maximumf>, %8, %cst_5 [1] : vector<16x32xf32> to vector<16xf32>
    %15 = vector.shape_cast %14 : vector<16xf32> to vector<16x1xf32>
    %16 = vector.broadcast %15 : vector<16x1xf32> to vector<16x32xf32>
    %17 = arith.subf %8, %16 : vector<16x32xf32>
    %18 = math.exp %17 : vector<16x32xf32>
    %cst_6 = arith.constant dense<0.000000e+00> : vector<16xf32>
    %19 = vector.multi_reduction <add>, %18, %cst_6 [1] : vector<16x32xf32> to vector<16xf32>
    %20 = vector.shape_cast %19 : vector<16xf32> to vector<16x1xf32>
    %21 = math.log %20 : vector<16x1xf32>
    %22 = arith.addf %21, %15 : vector<16x1xf32>
    %cst_7 = arith.constant 1.000000e+00 : f32
    %23 = vector.broadcast %cst_7 : f32 to vector<16x1xf32>
    %24 = arith.subf %23, %13 : vector<16x1xf32>
    %25 = vector.broadcast %cst_1 : f32 to vector<16x1xf32>
    %26 = arith.mulf %24, %25 : vector<16x1xf32>
    %27 = vector.broadcast %12 : vector<16x1xi32> to vector<16x32xi32>
    %28 = arith.cmpi eq, %3, %27 : vector<16x32xi32>
    %29 = arith.addf %26, %13 : vector<16x1xf32>
    %30 = vector.shape_cast %29 : vector<16x1xf32> to vector<16x1xf32>
    %31 = vector.broadcast %30 : vector<16x1xf32> to vector<16x32xf32>
    %32 = vector.shape_cast %26 : vector<16x1xf32> to vector<16x1xf32>
    %33 = vector.broadcast %32 : vector<16x1xf32> to vector<16x32xf32>
    %34 = arith.select %28, %31, %33 : vector<16x32xi1>, vector<16x32xf32>
    %35 = arith.mulf %34, %8 : vector<16x32xf32>
    %cst_8 = arith.constant dense<0.000000e+00> : vector<16xf32>
    %36 = vector.multi_reduction <add>, %35, %cst_8 [1] : vector<16x32xf32> to vector<16xf32>
    %37 = vector.shape_cast %36 : vector<16xf32> to vector<16x1xf32>
    %38 = arith.subf %22, %37 : vector<16x1xf32>
    %39 = vector.broadcast %cst_2 : f32 to vector<16x1xf32>
    %40 = arith.mulf %24, %39 : vector<16x1xf32>
    %41 = arith.subf %38, %40 : vector<16x1xf32>
    %cst_9 = arith.constant dense<0.000000e+00> : vector<1xf32>
    %42 = vector.multi_reduction <add>, %41, %cst_9 [0] : vector<16x1xf32> to vector<1xf32>
    %43 = vector.shape_cast %42 : vector<1xf32> to vector<1x1xf32>
    %44 = arith.addf %4, %43 : vector<1x1xf32>
    %c1_i32 = arith.constant 1 : i32
    %c0_10 = arith.constant 0 : index
    %c0_11 = arith.constant 0 : index
    %45 = vector.load %arg5[%c0_10, %c0_11] : memref<1x1xf32, #tpu.memory_space<vmem>>, vector<1x1xf32>
    %46 = arith.addf %45, %44 : vector<1x1xf32>
    %c0_12 = arith.constant 0 : index
    %c0_13 = arith.constant 0 : index
    %47 = vector.load %arg5[%c0_12, %c0_13] : memref<1x1xf32, #tpu.memory_space<vmem>>, vector<1x1xf32>
    tpu.vector_store %arg5[%c0_12, %c0_13], %46 {strides = array<i32>} : memref<1x1xf32, #tpu.memory_space<vmem>>, vector<1x1xf32>,
    %c0_i32_14 = arith.constant 0 : i32
    %48 = arith.cmpi eq, %arg1, %c0_i32_14 : i32
    %49 = arith.extui %48 : i1 to i32
    %c0_i32_15 = arith.constant 0 : i32
    %50 = arith.cmpi ne, %49, %c0_i32_15 : i32
    scf.if %50 {
      %c0_16 = arith.constant 0 : index
      %c0_17 = arith.constant 0 : index
      %51 = vector.load %arg5[%c0_16, %c0_17] : memref<1x1xf32, #tpu.memory_space<vmem>>, vector<1x1xf32>
      %c0_18 = arith.constant 0 : index
      %c0_19 = arith.constant 0 : index
      %c0_20 = arith.constant 0 : index
      %52 = vector.load %arg4[%c0_18, %c0_19, %c0_20] : memref<1x1x1xf32, #tpu.memory_space<vmem>>, vector<1x1x1xf32>
      %53 = vector.shape_cast %52 : vector<1x1x1xf32> to vector<1x1xf32>
      %54 = vector.shape_cast %51 : vector<1x1xf32> to vector<1x1x1xf32>
      tpu.vector_store %arg4[%c0_18, %c0_19, %c0_20], %54 {strides = array<i32>} : memref<1x1x1xf32, #tpu.memory_space<vmem>>, vector<1x1x1xf32>,
    } else {
    }
    return
  }
  func.func @transform_0(%arg0: i32, %arg1: i32) -> (i32, i32) {
    %c1_i32 = arith.constant 1 : i32
    %0 = arith.muli %arg0, %c1_i32 : i32
    %1 = arith.addi %0, %arg1 : i32
    %c0_i32 = arith.constant 0 : i32
    %2 = arith.minsi %1, %c0_i32 : i32
    %c0_i32_0 = arith.constant 0 : i32
    %c0_i32_1 = arith.constant 0 : i32
    return %2, %c0_i32_0 : i32, i32
  }
  func.func @transform_1(%arg0: i32, %arg1: i32) -> (i32, i32) {
    %c1_i32 = arith.constant 1 : i32
    %0 = arith.muli %arg0, %c1_i32 : i32
    %1 = arith.addi %0, %arg1 : i32
    %c0_i32 = arith.constant 0 : i32
    %2 = arith.minsi %1, %c0_i32 : i32
    %c0_i32_0 = arith.constant 0 : i32
    %c0_i32_1 = arith.constant 0 : i32
    return %2, %c0_i32_0 : i32, i32
  }
  func.func @transform_2(%arg0: i32, %arg1: i32) -> (i32, i32, i32) {
    %c0_i32 = arith.constant 0 : i32
    %c0_i32_0 = arith.constant 0 : i32
    %c0_i32_1 = arith.constant 0 : i32
    return %arg0, %c0_i32, %c0_i32_0 : i32, i32, i32
  }
}

</mosaic_0001>

<bundles_post_ra>
// kernel: tpu_custom_call.1
= control target key start
LH: loop header
LB: loop body
LE: loop exit
PB: predicated region body
PF: predicated region fallthrough
CT: control target
= control target key end

     0   :  { %vm90_vm0 = vcmask 261120   ;;  %v274_v4 = vmov 0   ;;  %v275_v7 = vmov 1   ;;  %s338_s0 = inlined_call_operand.vmem [shape: f32[16,32], index: 0, kind: input, shape index: {}]   ;;  %s339_s1 = inlined_call_operand.vmem [shape: f32[16,2], index: 1, kind: input, shape index: {}]   ;;  %s340_s2 = inlined_call_operand.hbm [shape: f32[1,1,1], index: 2, kind: output, shape index: {}]  }
   0x1   :  { %v84_v0 = vld [vmem:[%s338_s0] sm:$0xff]  ;;  %v85_v1 = vld [vmem:[%s338_s0 + $0x8] sm:$0xff]  ;;  %239 = vset.pattern.permute.xlu1 %v274_v4  ;;  %240 = vset.pattern.permute.xlu0 %v275_v7 }
   0x2   :  { %v304_v2 = vld [vmem:[%s339_s1] sm:$0xff]  ;;  %v91_v3 = vsel %vm90_vm0, %v84_v0, -inf  ;;  %v311_v6 = vld [vmem:[%s339_s1 + $0x8] sm:$0xff] }
   0x3   :  { %v229_v5 = vtrunc.f32 %v304_v2 }
   0x4   :  { %7 = vsyncpa [#allocation4], 0  ;;  %92 = vmax.xlane.f32.xlu0 %v91_v3  ;;  %v231_v8 = vtrunc.f32 %v311_v6  ;;  %v116_v9 = vsub.f32 1.0, %v311_v6  ;;  %v94_v10 = vsel %vm90_vm0, %v85_v1, -inf  ;;  %v115_v15 = vsub.f32 1.0, %v304_v2  ;;  %s278_s0 = smov 127  }
   0x5   :  { %v230_v11 = vcvt.f32.s32 %v229_v5  ;;  %v82_v22 = vlaneseq  ;;  %vm165_vm3 = vcmask 15368   ;;  %vm80_vm4 = vcmask 0   ;;  %s279_s1 = smov [#allocation3]  }
   0x6   :  { %v232_v12 = vcvt.f32.s32 %v231_v8  ;;  %v118_v13 = vmul.f32 0.03125, %v116_v9  ;;  %v117_v16 = vmul.f32 0.03125, %v115_v15  ;;  %v161_v50 = vmul.f32 3.465736, %v115_v15  ;;  %s209_s17 = sshll.u32 %s279_s1, 4  ;;  %s210_s17 = int_to_ptr.vmem [resolvable:$true] %s209_s17 }
   0x7   :  { %120 = vperm.xlu1 %239, %v230_v11   ;;  %v83_v27 = vand.u32 127, %v82_v22  ;;  %v162_v53 = vmul.f32 3.465736, %v116_v9  ;;  %v276_v58 = vmov 0.0   ;;  %v277_v63 = vmov 1966171168   ;;  %p255_p1 = scmp.lt.s32.totalorder %s210_s17, %s210_s17 }
   0x8   :  { %95 = vmax.xlane.f32.xlu0 %v94_v10  ;;  %v128_v14 = vadd.f32 %v118_v13, %v311_v6  ;;  %v127_v17 = vadd.f32 %v117_v16, %v304_v2  ;;  %81 = vst.msk [vmem:[#allocation2] sm:$0x1] %vm80_vm4, %v276_v58  ;;  %v182_v2 = vshrl.u32 %v82_v22, 7  ;;  %s250_s18 = scalar_lea.vmem %s210_s17, 16  ;;  %s254_s19 = scalar_lea.vmem %s210_s17, 32 }
   0x9   :  { %p251_p0 = scmp.ne.s32.totalorder %s210_s17, %s250_s18  ;;  %p256_p2 = scmp.lt.s32.totalorder %s254_s19, %s250_s18 }
   0xb   :  { %123 = vperm.xlu1 %239, %v232_v12   ;;  %p257_p3 = por %p256_p2, %p255_p1 }
   0xd   :  { %p258_p4 = pnand %p257_p3, %p251_p0 }
   0xf   :  { %241 = vset.pattern.permute.xlu1 %v275_v7  ;;  %v176_v11 = vld [vmem:[#allocation2] sm:$0x1] }
  0x10   :  { %136 = vperm.xlu1 %241, %v128_v14  }
  0x14   :  { %141 = vperm.xlu1 %241, %v117_v16  }
  0x18   :  { %146 = vperm.xlu1 %241, %v118_v13  }
  0x1e   :  { %131 = vperm.xlu0 %240, %v127_v17  }
  0x86   :  { %v121_v18 = vpop.permute.xlu1 %120 }
  0x87   :  { %vm125_vm1 = vcmp.eq.s32.totalorder %v83_v27, %v121_v18 }
  0x8a   :  { %v124_v19 = vpop.permute.xlu1 %123 }
  0x8b   :  { %vm126_vm2 = vcmp.eq.s32.totalorder %v83_v27, %v124_v19 }
  0x8f   :  { %v137_v23 = vpop.permute.xlu1 %136 }
  0x91   :  { %v93_v20 = vpop.xlane.xlu0 %92 }
  0x92   :  { %v97_v21 = vsub.f32 %v84_v0, %v93_v20 }
  0x93   :  { %v142_v29 = vpop.permute.xlu1 %141 }
  0x94   :  { %v99_v24 = vmul.f32 1.442695, %v97_v21 }
  0x95   :  { %v96_v25 = vpop.xlane.xlu0 %95 }
  0x96   :  { %242 = vpow2.f32 %v99_v24  ;;  %v98_v26 = vsub.f32 %v85_v1, %v96_v25 }
  0x97   :  { %v147_v32 = vpop.permute.xlu1 %146 }
  0x98   :  { %v101_v28 = vmul.f32 1.442695, %v98_v26  ;;  %v150_v36 = vsel %vm126_vm2, %v137_v23, %v147_v32 }
  0x99   :  { %v152_v40 = vmul.f32 %v150_v36, %v85_v1 }
  0x9a   :  { %244 = vpow2.f32 %v101_v28 }
  0x9b   :  { %v156_v41 = vsel %vm90_vm0, %v152_v40, 0.0 }
  0x9d   :  { %v132_v30 = vpop.permute.xlu0 %131 }
  0x9e   :  { %v149_v31 = vsel %vm125_vm1, %v132_v30, %v142_v29 }
  0x9f   :  { %v151_v33 = vmul.f32 %v149_v31, %v84_v0  ;;  %v179_v0 = vunpack.c.l.s4 %v277_v63 }
  0xa0   :  { %v243_v34 = vpop.eup %242 }
  0xa1   :  { %v103_v35 = vsel %vm90_vm0, %v243_v34, 0.0  ;;  %v153_v37 = vsel %vm90_vm0, %v151_v33, 0.0  ;;  %v180_v4 = vunpack.c.0.s8 %v179_v0 }
  0xa2   :  { %104 = vadd.xlane.f32.xlu1 %v103_v35 }
  0xa3   :  { %v183_v7 = vsub.s32 %v180_v4, %v182_v2 }
  0xa4   :  { %v245_v38 = vpop.eup %244 }
  0xa5   :  { %v106_v39 = vsel %vm90_vm0, %v245_v38, 0.0 }
  0xa6   :  { %107 = vadd.xlane.f32.xlu0 %v106_v39  ;;  %154 = vadd.xlane.f32.xlu1 %v153_v37 }
  0xaa   :  { %157 = vadd.xlane.f32.xlu1 %v156_v41 }
 0x12f   :  { %v105_v42 = vpop.xlane.xlu1 %104 }
 0x130   :  { %246 = vlog2.f32 %v105_v42 }
 0x133   :  { %v108_v43 = vpop.xlane.xlu0 %107  ;;  %v155_v46 = vpop.xlane.xlu1 %154 }
 0x134   :  { %248 = vlog2.f32 %v108_v43 }
 0x137   :  { %v158_v54 = vpop.xlane.xlu1 %157 }
 0x13a   :  { %v247_v44 = vpop.eup %246 }
 0x13b   :  { %v110_v45 = vmul.f32 0.6931472, %v247_v44 }
 0x13d   :  { %v113_v47 = vadd.f32 %v110_v45, %v93_v20 }
 0x13e   :  { %v249_v48 = vpop.eup %248 }
 0x13f   :  { %v112_v49 = vmul.f32 0.6931472, %v249_v48  ;;  %v159_v51 = vsub.f32 %v113_v47, %v155_v46 }
 0x141   :  { %v114_v52 = vadd.f32 %v112_v49, %v96_v25  ;;  %v163_v55 = vsub.f32 %v159_v51, %v161_v50 }
 0x143   :  { %v160_v56 = vsub.f32 %v114_v52, %v158_v54  ;;  %v166_v59 = vsel %vm165_vm3, %v163_v55, 0.0 }
 0x145   :  { %v164_v57 = vsub.f32 %v160_v56, %v162_v53 }
 0x147   :  { %v167_v60 = vsel %vm165_vm3, %v164_v57, 0.0 }
 0x148   :  { %v168_v61 = vadd.f32 %v167_v60, %v166_v59 }
 0x14a   :  { %v169_v62 = vrot.slane %v168_v61, 4 }
 0x14c   :  { %v170_v1 = vadd.f32 %v169_v62, %v168_v61 }
 0x14e   :  { %v171_v3 = vrot.slane %v170_v1, 2 }
 0x150   :  { %v172_v5 = vadd.f32 %v171_v3, %v170_v1 }
 0x152   :  { %v173_v6 = vrot.slane %v172_v5, 1 }
 0x154   :  { %v174_v8 = vadd.f32 %v173_v6, %v172_v5 }
 0x156   :  { %v184_v9 = vrot.slane %v174_v8, %v183_v7 }
 0x158   :  { %v191_v10 = vrot.slane %v184_v9, %v183_v7 }
 0x15a   :  { %192 = vrot.lane.b32.xlu1 %v191_v10, %s278_s0 }
 0x1cc   :  { %v193_v12 = vpop.permute.xlu1 %192 }
 0x1cd   :  { %v195_v13 = vadd.f32 %v193_v12, %v176_v11 }
 0x1cf   :  { %197 = vst.msk [vmem:[#allocation2] sm:$0x1] %vm80_vm4, %v195_v13 }
 0x1d6   :  { %v201_v14 = vld [vmem:[#allocation2] sm:$0x1] }
 0x1d7   :  { %202 = vst.msk [vmem:[#allocation3] sm:$0x1] %vm80_vm4, %v201_v14 }
 0x1d8   :  { %261 = shalt.err (!%p258_p4)
}
 0x1d9   :  { %s262_s22 = scalar_lea.hbm %s340_s2, 16 }
 0x1da   :  { %p263_p5 = scmp.ne.s32.totalorder %s340_s2, %s262_s22  ;;  %p266_p6 = scmp.lt.u32.totalorder %s262_s22, %s340_s2 }
 0x1dc   :  { %p268_p7 = pnand %p266_p6, %p263_p5 }
 0x1de   :  { %271 = shalt.err (!%p268_p7)
}
 0x1df   :  { %212 = dma.vmem_to_hbm [thread:$0]  %s210_s17, 16, %s340_s2, [#allocation4]  }
 0x1e0   :  { %272 = dma.done.wait [#allocation4], 16  }
 0x1e1   :  { %273 = vsyncadd [#allocation4], 4294967280 }
 0x1e2   :  { %216 = vsyncpa [#allocation4], 1 }

</bundles_post_ra>
